<compile_context>
chip_gen: v7x
topology: tpu7x:2x2x1
jax: 0.10.0
libtpu: 0.0.40
codegen_flags: <defaults>
</compile_context>

<pallas_src>
import functools

import jax
import jax.numpy as jnp
from jax.experimental import pallas as pl
from jax.experimental.pallas import tpu as pltpu

ALPHA = 0.25
GAMMA = 2
EPS = 1e-08
LANES = 128
SUBLANES = 8
MAX_BLOCK_ROWS = 4096     # (4096, 128) f32 = 2 MiB per input tile


def _pow_term(one_minus_pt, gamma):
    """(1 - pt) ** gamma.  Integer gamma -> VPU multiply chain (no pow)."""
    if float(gamma) == int(gamma) and int(gamma) >= 0:
        p = int(gamma)
        if p == 0:
            return jnp.ones_like(one_minus_pt)
        result = None
        base = one_minus_pt
        while p:                       # square-and-multiply, unrolled at trace
            if p & 1:
                result = base if result is None else result * base
            p >>= 1
            if p:
                base = base * base
        return result
    # Non-integer gamma: exp(g * log(x)) on the EUP, with x == 0 -> 0.
    safe = jnp.maximum(one_minus_pt, jnp.float32(1e-30))
    return jnp.where(one_minus_pt > 0.0,
                     jnp.exp(jnp.float32(gamma) * jnp.log(safe)),
                     jnp.float32(0.0))


@functools.lru_cache(maxsize=None)
def _detect_num_tensorcores():
    """2 on v7x-class chips (2 TensorCores/chip); 1 on v5e/v6e/unknown."""
    try:
        kind = jax.devices()[0].device_kind.lower().replace(" ", "")
    except Exception:  # pragma: no cover - defensive
        return 1
    if "v7" in kind or "tpu7" in kind:
        return 2
    return 1


def _focal_partial_kernel(x_ref, t_ref, acc_ref, *, gamma, block_rows,
                          tiles_per_core, total_tiles, two_core_grid,
                          may_overrun, has_tail, tail_rows, tail_lanes):
    if two_core_grid:
        c = pl.program_id(0)       # TensorCore split (CORE_PARALLEL)
        i = pl.program_id(1)       # tile loop ("arbitrary", accumulator axis)
        tile_idx = c * tiles_per_core + i
    else:
        i = pl.program_id(0)
        tile_idx = i

    @pl.when(i == 0)
    def _():
        acc_ref[...] = jnp.zeros_like(acc_ref)

    def compute(masked):
        # In-register upcast: HBM traffic stays at the native (maybe bf16) width.
        x = x_ref[...].astype(jnp.float32)
        t = t_ref[...].astype(jnp.float32)
        pt = x * t + (1.0 - x) * (1.0 - t)
        # NOTE: the (-alpha) factor is folded into the final scalar in JAX.
        contrib = _pow_term(1.0 - pt, gamma) * jnp.log(pt + EPS)
        if masked:
            # Only the last logical tile contains padded / out-of-bounds rows.
            row = jax.lax.broadcasted_iota(jnp.int32, (block_rows, LANES), 0)
            valid = row < tail_rows
            if tail_lanes:
                lane = jax.lax.broadcasted_iota(jnp.int32, (block_rows, LANES), 1)
                valid = jnp.logical_or(
                    valid, jnp.logical_and(row == tail_rows, lane < tail_lanes))
            contrib = jnp.where(valid, contrib, 0.0)
        # (block_rows,128) -> (block_rows//8, 8, 128) preserves vreg tiling, so
        # the axis-0 sum is plain VPU vreg adds (no per-step XLU reduce).
        partial = contrib.reshape(block_rows // SUBLANES, SUBLANES, LANES).sum(axis=0)
        acc_ref[...] += partial[None]

    if has_tail:
        if total_tiles > 1:
            @pl.when(tile_idx < total_tiles - 1)   # full, mask-free tiles
            def _():
                compute(masked=False)

        @pl.when(tile_idx == total_tiles - 1)      # only the tail tile masks
        def _():
            compute(masked=True)
    elif may_overrun:
        @pl.when(tile_idx < total_tiles)           # skip clamped duplicates
        def _():
            compute(masked=False)
    else:
        compute(masked=False)


def focal_loss(inputs, targets, alpha=ALPHA, gamma=GAMMA, reduction="mean",
               max_block_rows=MAX_BLOCK_ROWS):
    """Pallas TPU implementation of FocalLoss.forward.

    inputs/targets: matching shapes, probabilities in [0, 1] (any float dtype).
    Returns a scalar float32 for reduction in {"mean", "sum"}.
    """
    assert inputs.shape == targets.shape
    if reduction not in ("mean", "sum"):
        # TODO(synk): reduction='none' (full per-element loss tensor) is not
        # implemented in-kernel; only 'mean'/'sum' are supported.
        raise NotImplementedError("reduction must be 'mean' or 'sum'")

    n = int(inputs.size)
    x = jnp.ravel(inputs)          # free reshape, native dtype (no upcast copy)
    t = jnp.ravel(targets)

    # Pad only when strictly required to reshape to (rows, 128) with rows >= 8;
    # typical NCHW activations (H*W multiple of 128) need no copy at all.
    # (Larger blanket padding would force a full-array HBM copy; the ragged
    #  tail is instead neutralized by the gated last-tile mask in the kernel.)
    lane_pad = (-n) % LANES
    rows = (n + lane_pad) // LANES
    row_pad = SUBLANES - rows if rows < SUBLANES else 0
    total_pad = lane_pad + row_pad * LANES
    if total_pad:
        x = jnp.pad(x, (0, total_pad))
        t = jnp.pad(t, (0, total_pad))
    rows += row_pad

    x2 = x.reshape(rows, LANES)
    t2 = t.reshape(rows, LANES)

    # Tile rows: multiple of 8 (f32) / 16 (16-bit dtypes) for clean packing.
    itemsize = jnp.dtype(inputs.dtype).itemsize
    align = {4: SUBLANES, 2: 16, 1: 32}.get(itemsize, SUBLANES)
    block_rows = min(int(max_block_rows), rows)
    if block_rows >= align:
        block_rows = (block_rows // align) * align
    else:
        block_rows = (block_rows // SUBLANES) * SUBLANES
    block_rows = max(block_rows, SUBLANES)

    total_tiles = pl.cdiv(rows, block_rows)

    # Build the 2-core grid axis only on chips that actually have 2 TensorCores.
    num_cores = min(_detect_num_tensorcores(), total_tiles)
    two_core_grid = num_cores > 1
    tiles_per_core = pl.cdiv(total_tiles, num_cores)
    may_overrun = (num_cores * tiles_per_core != total_tiles)

    # Tail bookkeeping (static): elements beyond n live only in the LAST tile.
    has_tail = (total_tiles * block_rows * LANES != n)
    tail_rows = n // LANES - (total_tiles - 1) * block_rows
    tail_lanes = n % LANES

    kernel = functools.partial(
        _focal_partial_kernel,
        gamma=gamma, block_rows=block_rows, tiles_per_core=tiles_per_core,
        total_tiles=total_tiles, two_core_grid=two_core_grid,
        may_overrun=may_overrun, has_tail=has_tail,
        tail_rows=tail_rows, tail_lanes=tail_lanes)

    if two_core_grid:
        grid = (num_cores, tiles_per_core)
        if may_overrun:
            # Clamp so the DMA stays in-bounds; clamped duplicate tiles skip
            # all compute via the (unclamped) tile_idx < total_tiles gate.
            def in_map(c, i):
                return (jnp.minimum(c * tiles_per_core + i, total_tiles - 1), 0)
        else:
            def in_map(c, i):
                return (c * tiles_per_core + i, 0)
        out_map = lambda c, i: (c, 0, 0)
        core_sem = getattr(pltpu, "CORE_PARALLEL", None)
        arb_sem = getattr(pltpu, "ARBITRARY", None)
        if core_sem is not None and arb_sem is not None:
            dims = (core_sem, arb_sem)
        else:
            dims = ("parallel", "arbitrary")
    else:
        grid = (total_tiles,)
        in_map = lambda i: (i, 0)
        out_map = lambda i: (0, 0, 0)
        dims = ("arbitrary",)

    cost = pl.CostEstimate(
        flops=12 * n,
        transcendentals=n,
        bytes_accessed=2 * rows * LANES * itemsize
                       + num_cores * SUBLANES * LANES * 4)

    partials = pl.pallas_call(
        kernel,
        out_shape=jax.ShapeDtypeStruct((num_cores, SUBLANES, LANES),
                                       jnp.float32),
        grid_spec=pltpu.PrefetchScalarGridSpec(
            num_scalar_prefetch=0,
            grid=grid,
            in_specs=[
                pl.BlockSpec((block_rows, LANES), in_map),
                pl.BlockSpec((block_rows, LANES), in_map),
            ],
            out_specs=pl.BlockSpec((1, SUBLANES, LANES), out_map),
        ),
        compiler_params=pltpu.CompilerParams(
            dimension_semantics=dims,
            vmem_limit_bytes=32 * 1024 * 1024,
        ),
        cost_estimate=cost,
    )(x2, t2)

    # Tiny (cores, 8, 128) tree reduce in JAX; fold -alpha in once, scalar-side.
    total = jnp.float32(-alpha) * jnp.sum(partials)
    if reduction == "mean":
        return total / jnp.float32(n)
    return total


def focal_loss_ref(inputs, targets, alpha=ALPHA, gamma=GAMMA, reduction="mean"):
    pt = inputs * targets + (1 - inputs) * (1 - targets)
    fl = -alpha * (1 - pt) ** gamma * jnp.log(pt + EPS)
    return fl.mean() if reduction == "mean" else fl.sum()


if __name__ == "__main__":
    key = jax.random.PRNGKey(0)
    k1, k2 = jax.random.split(key)
    # Segmentation-style probabilities / binary targets, NCHW-shaped.
    B, C, H, W = 2, 4, 16, 16
    inputs = jax.nn.sigmoid(jax.random.normal(k1, (B, C, H, W), jnp.float32))
    targets = (jax.random.uniform(k2, (B, C, H, W)) > 0.5).astype(jnp.float32)

    out_mean = jax.block_until_ready(focal_loss(inputs, targets, reduction="mean"))
    ref_mean = focal_loss_ref(inputs, targets, reduction="mean")
    assert jnp.allclose(out_mean, ref_mean, rtol=1e-5, atol=1e-6), (out_mean,
                                                                    ref_mean)

    out_sum = jax.block_until_ready(focal_loss(inputs, targets, reduction="sum"))
    ref_sum = focal_loss_ref(inputs, targets, reduction="sum")
    assert jnp.allclose(out_sum, ref_sum, rtol=1e-5, atol=1e-4), (out_sum,
                                                                  ref_sum)

    # Ragged shape: exercises lane/row padding and the gated tail-mask branch.
    k3, k4 = jax.random.split(k2)
    ri = jax.nn.sigmoid(jax.random.normal(k3, (2, 3, 7, 11), jnp.float32))
    rt = (jax.random.uniform(k4, (2, 3, 7, 11)) > 0.5).astype(jnp.float32)
    out_r = jax.block_until_ready(focal_loss(ri, rt))
    ref_r = focal_loss_ref(ri, rt)
    assert jnp.allclose(out_r, ref_r, rtol=1e-5, atol=1e-6), (out_r, ref_r)

    # Multi-tile path (small max_block_rows override): exercises the resident
    # accumulator across grid steps plus the last-tile-only mask.
    mi = jax.nn.sigmoid(jax.random.normal(k3, (2, 4, 16, 17), jnp.float32))
    mt = (jax.random.uniform(k4, (2, 4, 16, 17)) > 0.5).astype(jnp.float32)
    out_m = jax.block_until_ready(focal_loss(mi, mt, max_block_rows=8))
    ref_m = focal_loss_ref(mi, mt)
    assert jnp.allclose(out_m, ref_m, rtol=1e-5, atol=1e-6), (out_m, ref_m)

    print("KERNEL_OK")
</pallas_src>

<mosaic_0001>
module attributes {stable_mosaic.version = 11 : i64} {
  func.func @_focal_partial_kernel(%arg0: i32, %arg1: memref<16x128xf32, #tpu.memory_space<vmem>>, %arg2: memref<16x128xf32, #tpu.memory_space<vmem>>, %arg3: memref<1x8x128xf32, #tpu.memory_space<vmem>>) attributes {dimension_semantics = [#tpu.dimension_semantics<arbitrary>], iteration_bounds = array<i64: 1>, scalar_prefetch = 0 : i64, scratch_operands = 0 : i64, tpu.core_type = #tpu.core_type<tc>, window_params = [{transform_indices = @transform_0, window_bounds = array<i64: 16, 128>}, {transform_indices = @transform_1, window_bounds = array<i64: 16, 128>}, {pipeline_mode = #tpu.pipeline_mode<synchronous>, transform_indices = @transform_2, window_bounds = array<i64: 1, 8, 128>}]} {
    %c0_i32 = arith.constant 0 : i32
    %0 = arith.cmpi eq, %arg0, %c0_i32 : i32
    %1 = arith.extui %0 : i1 to i32
    %c0_i32_0 = arith.constant 0 : i32
    %2 = arith.cmpi ne, %1, %c0_i32_0 : i32
    scf.if %2 {
      %cst_14 = arith.constant 0.000000e+00 : f32
      %25 = vector.broadcast %cst_14 : f32 to vector<1x8x128xf32>
      %c0_15 = arith.constant 0 : index
      %c0_16 = arith.constant 0 : index
      %c0_17 = arith.constant 0 : index
      %26 = vector.load %arg3[%c0_15, %c0_16, %c0_17] : memref<1x8x128xf32, #tpu.memory_space<vmem>>, vector<1x8x128xf32>
      tpu.vector_store %arg3[%c0_15, %c0_16, %c0_17], %25 {strides = array<i32>} : memref<1x8x128xf32, #tpu.memory_space<vmem>>, vector<1x8x128xf32>,
    } else {
    }
    %c0 = arith.constant 0 : index
    %c0_1 = arith.constant 0 : index
    %3 = vector.load %arg1[%c0, %c0_1] : memref<16x128xf32, #tpu.memory_space<vmem>>, vector<16x128xf32>
    %c0_2 = arith.constant 0 : index
    %c0_3 = arith.constant 0 : index
    %4 = vector.load %arg2[%c0_2, %c0_3] : memref<16x128xf32, #tpu.memory_space<vmem>>, vector<16x128xf32>
    %5 = arith.mulf %3, %4 : vector<16x128xf32>
    %cst = arith.constant 1.000000e+00 : f32
    %6 = vector.broadcast %cst : f32 to vector<16x128xf32>
    %7 = arith.subf %6, %3 : vector<16x128xf32>
    %cst_4 = arith.constant 1.000000e+00 : f32
    %8 = vector.broadcast %cst_4 : f32 to vector<16x128xf32>
    %9 = arith.subf %8, %4 : vector<16x128xf32>
    %10 = arith.mulf %7, %9 : vector<16x128xf32>
    %11 = arith.addf %5, %10 : vector<16x128xf32>
    %cst_5 = arith.constant 1.000000e+00 : f32
    %12 = vector.broadcast %cst_5 : f32 to vector<16x128xf32>
    %13 = arith.subf %12, %11 : vector<16x128xf32>
    %14 = arith.mulf %13, %13 : vector<16x128xf32>
    %cst_6 = arith.constant 9.99999993E-9 : f32
    %15 = vector.broadcast %cst_6 : f32 to vector<16x128xf32>
    %16 = arith.addf %11, %15 : vector<16x128xf32>
    %17 = math.log %16 : vector<16x128xf32>
    %18 = arith.mulf %14, %17 : vector<16x128xf32>
    %19 = vector.shape_cast %18 : vector<16x128xf32> to vector<2x8x128xf32>
    %cst_7 = arith.constant dense<0.000000e+00> : vector<8x128xf32>
    %20 = vector.multi_reduction <add>, %19, %cst_7 [0] : vector<2x8x128xf32> to vector<8x128xf32>
    %c0_8 = arith.constant 0 : index
    %c0_9 = arith.constant 0 : index
    %c0_10 = arith.constant 0 : index
    %21 = vector.load %arg3[%c0_8, %c0_9, %c0_10] : memref<1x8x128xf32, #tpu.memory_space<vmem>>, vector<1x8x128xf32>
    %22 = vector.shape_cast %20 : vector<8x128xf32> to vector<1x8x128xf32>
    %23 = arith.addf %21, %22 : vector<1x8x128xf32>
    %c0_11 = arith.constant 0 : index
    %c0_12 = arith.constant 0 : index
    %c0_13 = arith.constant 0 : index
    %24 = vector.load %arg3[%c0_11, %c0_12, %c0_13] : memref<1x8x128xf32, #tpu.memory_space<vmem>>, vector<1x8x128xf32>
    tpu.vector_store %arg3[%c0_11, %c0_12, %c0_13], %23 {strides = array<i32>} : memref<1x8x128xf32, #tpu.memory_space<vmem>>, vector<1x8x128xf32>,
    return
  }
  func.func @transform_0(%arg0: i32) -> (i32, i32) {
    %c0_i32 = arith.constant 0 : i32
    %c0_i32_0 = arith.constant 0 : i32
    return %arg0, %c0_i32 : i32, i32
  }
  func.func @transform_1(%arg0: i32) -> (i32, i32) {
    %c0_i32 = arith.constant 0 : i32
    %c0_i32_0 = arith.constant 0 : i32
    return %arg0, %c0_i32 : i32, i32
  }
  func.func @transform_2(%arg0: i32) -> (i32, i32, i32) {
    %c0_i32 = arith.constant 0 : i32
    %c0_i32_0 = arith.constant 0 : i32
    %c0_i32_1 = arith.constant 0 : i32
    %c0_i32_2 = arith.constant 0 : i32
    return %c0_i32, %c0_i32_0, %c0_i32_1 : i32, i32, i32
  }
}

</mosaic_0001>

<bundles_post_ra>
// kernel: tpu_custom_call.1
= control target key start
LH: loop header
LB: loop body
LE: loop exit
PB: predicated region body
PF: predicated region fallthrough
CT: control target
= control target key end

     0   :  { %7 = vsyncpa [#allocation3], 0  ;;  %s229_s0 = inlined_call_operand.hbm [shape: f32[16,128], index: 0, kind: input, shape index: {}]   ;;  %s230_s1 = inlined_call_operand.hbm [shape: f32[16,128], index: 1, kind: input, shape index: {}]   ;;  %s231_s2 = inlined_call_operand.hbm [shape: f32[1,8,128], index: 2, kind: output, shape index: {}]  }
   0x1   :  { %8 = vsyncpa [#allocation6], 0 }
   0x2   :  { %9 = vsyncpa [#allocation4], 0  ;;  %s173_s9 = smov [#allocation2]   ;;  %s101_s13 = scalar_lea.hbm %s229_s0, 256 }
   0x3   :  { %s15_s10 = sshll.u32 %s173_s9, 4  ;;  %p102_p0 = scmp.ne.s32.totalorder %s229_s0, %s101_s13  ;;  %s16_s10 = int_to_ptr.vmem [resolvable:$true] %s15_s10 }
   0x4   :  { %p105_p1 = scmp.lt.u32.totalorder %s101_s13, %s229_s0 }
   0x6   :  { %p107_p2 = pnand %p105_p1, %p102_p0 }
   0x8   :  { %110 = shalt.err (!%p107_p2)
}
   0x9   :  { %s111_s18 = scalar_lea.vmem %s16_s10, 256  ;;  %p116_p4 = scmp.lt.s32.totalorder %s16_s10, %s16_s10 }
   0xa   :  { %p112_p3 = scmp.ne.s32.totalorder %s16_s10, %s111_s18  ;;  %p117_p5 = scmp.lt.s32.totalorder %s111_s18, %s111_s18 }
   0xc   :  { %p118_p6 = por %p117_p5, %p116_p4 }
   0xe   :  { %p119_p7 = pnand %p118_p6, %p112_p3 }
  0x10   :  { %122 = shalt.err (!%p119_p7)
}
  0x11   :  { %s174_s19 = smov 128   ;;  %s175_s20 = smov 8  }
  0x12   :  { %21 = dma.hbm_to_vmem [thread:$0]  %s229_s0, 256, %s16_s10, [#allocation3], %s174_s19, %s174_s19, %s175_s20  }
  0x13   :  { %s176_s23 = smov [#allocation5]   ;;  %s123_s27 = scalar_lea.hbm %s230_s1, 256 }
  0x14   :  { %s27_s24 = sshll.u32 %s176_s23, 4  ;;  %p124_p8 = scmp.ne.s32.totalorder %s230_s1, %s123_s27  ;;  %s28_s24 = int_to_ptr.vmem [resolvable:$true] %s27_s24 }
  0x15   :  { %p127_p9 = scmp.lt.u32.totalorder %s123_s27, %s230_s1 }
  0x17   :  { %p129_p10 = pnand %p127_p9, %p124_p8 }
  0x19   :  { %132 = shalt.err (!%p129_p10)
}
  0x1a   :  { %s133_s4 = scalar_lea.vmem %s28_s24, 256  ;;  %p138_p12 = scmp.lt.s32.totalorder %s28_s24, %s28_s24 }
  0x1b   :  { %p134_p11 = scmp.ne.s32.totalorder %s28_s24, %s133_s4  ;;  %p139_p13 = scmp.lt.s32.totalorder %s133_s4, %s133_s4 }
  0x1d   :  { %p140_p0 = por %p139_p13, %p138_p12 }
  0x1f   :  { %p141_p1 = pnand %p140_p0, %p134_p11 }
  0x21   :  { %144 = shalt.err (!%p141_p1)
}
  0x22   :  { %33 = dma.hbm_to_vmem [thread:$0]  %s230_s1, 256, %s28_s24, [#allocation6], %s174_s19, %s174_s19, %s175_s20  }
  0x23   :  { %167 = dma.done.wait [#allocation3], 256  }
  0x24   :  { %168 = vsyncadd [#allocation3], 4294967040 }
  0x25   :  { %169 = dma.done.wait [#allocation6], 256  }
  0x26   :  { %170 = vsyncadd [#allocation6], 4294967040  ;;  %v45_v0 = vld [vmem:[#allocation2] sm:$0xff]  ;;  %v46_v1 = vld [vmem:[#allocation2 + $0x8] sm:$0xff]  ;;  %s177_s1 = smov [#allocation7]  }
  0x27   :  { %v47_v2 = vld [vmem:[#allocation5] sm:$0xff]  ;;  %v48_v3 = vld [vmem:[#allocation5 + $0x8] sm:$0xff]  ;;  %v51_v5 = vsub.f32 1.0, %v45_v0  ;;  %v52_v6 = vsub.f32 1.0, %v46_v1  ;;  %s81_s6 = sshll.u32 %s177_s1, 4  ;;  %s82_s6 = int_to_ptr.vmem [resolvable:$true] %s81_s6 }
  0x28   :  { %v49_v4 = vmul.f32 %v47_v2, %v45_v0  ;;  %v53_v7 = vsub.f32 1.0, %v47_v2  ;;  %v50_v8 = vmul.f32 %v48_v3, %v46_v1  ;;  %v54_v9 = vsub.f32 1.0, %v48_v3  ;;  %s145_s7 = scalar_lea.vmem %s82_s6, 128  ;;  %p150_p3 = scmp.lt.s32.totalorder %s82_s6, %s82_s6 }
  0x29   :  { %p146_p2 = scmp.ne.s32.totalorder %s82_s6, %s145_s7  ;;  %p151_p4 = scmp.lt.s32.totalorder %s145_s7, %s145_s7 }
  0x2a   :  { %v55_v10 = vmul.f32 %v53_v7, %v51_v5  ;;  %v56_v11 = vmul.f32 %v54_v9, %v52_v6 }
  0x2b   :  { %p152_p5 = por %p151_p4, %p150_p3 }
  0x2c   :  { %v57_v12 = vadd.f32 %v55_v10, %v49_v4  ;;  %v58_v13 = vadd.f32 %v56_v11, %v50_v8 }
  0x2d   :  { %p153_p6 = pnand %p152_p5, %p146_p2 }
  0x2e   :  { %v63_v14 = vadd.f32 1e-08, %v57_v12  ;;  %v64_v15 = vadd.f32 1e-08, %v58_v13  ;;  %v59_v16 = vsub.f32 1.0, %v57_v12  ;;  %v60_v17 = vsub.f32 1.0, %v58_v13 }
  0x30   :  { %97 = vlog2.f32 %v63_v14  ;;  %v61_v18 = vmul.f32 %v59_v16, %v59_v16  ;;  %v62_v20 = vmul.f32 %v60_v17, %v60_v17 }
  0x31   :  { %99 = vlog2.f32 %v64_v15 }
  0x3a   :  { %v98_v19 = vpop.eup %97 }
  0x3b   :  { %v100_v21 = vpop.eup %99  ;;  %v66_v22 = vmul.f32 0.6931472, %v98_v19 }
  0x3c   :  { %v68_v23 = vmul.f32 0.6931472, %v100_v21 }
  0x3d   :  { %v69_v24 = vmul.f32 %v66_v22, %v61_v18 }
  0x3e   :  { %v70_v25 = vmul.f32 %v68_v23, %v62_v20 }
  0x40   :  { %v71_v26 = vadd.f32 %v70_v25, %v69_v24 }
  0x42   :  { %74 = vst [vmem:[#allocation7] sm:$0xff] %v71_v26 }
  0x43   :  { %156 = shalt.err (!%p153_p6)
}
  0x44   :  { %s157_s10 = scalar_lea.hbm %s231_s2, 128 }
  0x45   :  { %p158_p7 = scmp.ne.s32.totalorder %s231_s2, %s157_s10  ;;  %p161_p8 = scmp.lt.u32.totalorder %s157_s10, %s231_s2 }
  0x47   :  { %p163_p9 = pnand %p161_p8, %p158_p7 }
  0x49   :  { %166 = shalt.err (!%p163_p9)
}
  0x4a   :  { %84 = dma.vmem_to_hbm [thread:$0]  %s82_s6, 128, %s231_s2, [#allocation4]  }
  0x4b   :  { %171 = dma.done.wait [#allocation4], 128  }
  0x4c   :  { %172 = vsyncadd [#allocation4], 4294967168 }
  0x4d   :  { %88 = vsyncpa [#allocation3], 1 }
  0x4e   :  { %89 = vsyncpa [#allocation6], 1 }
  0x4f   :  { %90 = vsyncpa [#allocation4], 1 }

</bundles_post_ra>
